<compile_context>
chip_gen: v7x
topology: tpu7x:2x2x1
jax: 0.10.0
libtpu: 0.0.40
codegen_flags: <defaults>
</compile_context>

<pallas_src>
import jax
import jax.numpy as jnp
from jax.experimental import pallas as pl
from jax.experimental.pallas import tpu as pltpu
from typing import NamedTuple

LANE = 128
_TILE_ROUND = 16  # lcm of f32 (8) / bf16 (16) sublane packing


def _round_up(v, m):
    return ((v + m - 1) // m) * m


def _leaky_relu(x, negative_slope=0.01):
    return jnp.where(x > 0, x, negative_slope * x)


# ---------------------------------------------------------------------------
# Kernel: fused forward for one batch tile. Works for any number of layers.
#   refs = (x_ref, w1, b1, w2, b2, ..., wL, bL, o_ref)
# Weights are bf16 (or f32 for the parity path); biases are f32 (1, H);
# the last layer has no activation. Intermediates never touch HBM.
# ---------------------------------------------------------------------------
def mlp_kernel(*refs):
    x_ref, *wb_refs, o_ref = refs
    n_layers = len(wb_refs) // 2

    h = x_ref[...]
    for li in range(n_layers):
        w_ref = wb_refs[2 * li]
        b_ref = wb_refs[2 * li + 1]
        # MXU dot in the weights' dtype (bf16 by default), f32 accumulation;
        # bias-add / LeakyReLU in f32 (v5e VPU has no bf16 ALU).
        h = jnp.dot(h.astype(w_ref.dtype), w_ref[...],
                    preferred_element_type=jnp.float32) + b_ref[...]
        if li < n_layers - 1:
            h = _leaky_relu(h)
    o_ref[...] = h.astype(o_ref.dtype)


# ---------------------------------------------------------------------------
# One-time parameter preparation (do NOT call per forward).
# ---------------------------------------------------------------------------
class PreparedParams(NamedTuple):
    flat: tuple   # (w1, b1, ..., wo_padded, bo_padded) ready to feed the kernel
    d_out: int    # true (unpadded) output width


def prepare_params(params, *, compute_dtype=jnp.bfloat16):
    """Cast weights to `compute_dtype`, biases to f32, and zero-pad the output
    layer to a lane-dense width (multiple of 128) so the final matmul/store is
    unmasked. Hoisted out of the forward: no per-call cast/pad HBM traffic."""
    *hidden_layers, (wo, bo) = params
    d_out = wo.shape[-1]
    d_pad = max(LANE, _round_up(d_out, LANE))

    wo_p = jnp.zeros((wo.shape[0], d_pad), wo.dtype).at[:, :d_out].set(wo)
    bo_p = jnp.zeros((d_pad,), jnp.float32).at[:d_out].set(
        bo.reshape(-1).astype(jnp.float32))

    flat = []
    for (w, b) in hidden_layers:
        flat.append(w.astype(compute_dtype))
        flat.append(b.astype(jnp.float32).reshape(1, -1))
    flat.append(wo_p.astype(compute_dtype))
    flat.append(bo_p.reshape(1, -1))
    return PreparedParams(tuple(flat), d_out)


def _choose_tile_b(B, max_tile=1024, min_programs=2):
    """Largest tile that still yields >= min_programs grid steps (keeps both
    v7x TensorCores busy) and stays within max_tile rows."""
    tile = min(max_tile, _round_up((B + min_programs - 1) // min_programs,
                                   _TILE_ROUND))
    return max(tile, _TILE_ROUND)


# ---------------------------------------------------------------------------
# Forward wrapper.
# ---------------------------------------------------------------------------
def simple_network_forward(x, prepared: PreparedParams, *,
                           out_dtype=jnp.bfloat16,
                           max_single_batch=512,
                           tile_b=None,
                           max_tile_b=1024):
    """SimpleNetwork forward as one fused Pallas kernel.

    B <= max_single_batch (and no explicit tile_b): single program, no grid,
    no pipeline prologue/epilogue. Larger B: batch-tiled grid with large tiles
    (>= 2 programs so v7x megacore sharding applies); ragged batches are
    zero-padded up to a tile multiple and trimmed afterwards.
    """
    flat, d_out = prepared.flat, prepared.d_out
    B, D_in = x.shape
    D_pad = flat[-1].shape[-1]

    # --- small batch: one program, everything resident in VMEM once ---
    if tile_b is None and B <= max_single_batch:
        out = pl.pallas_call(
            mlp_kernel,
            out_shape=jax.ShapeDtypeStruct((B, D_pad), out_dtype),
        )(x, *flat)
        return out[:, :d_out]

    # --- large batch: batch-tiled grid, weights/biases grid-invariant ---
    if tile_b is None:
        tile_b = _choose_tile_b(B, max_tile=max_tile_b)
    tile_b = _round_up(tile_b, _TILE_ROUND)

    B_pad = _round_up(B, tile_b)
    if B_pad != B:
        x = jnp.pad(x, ((0, B_pad - B), (0, 0)))
    grid = (B_pad // tile_b,)

    def full_spec(arr):
        # Grid-invariant operand (weights/biases, <400 KB total at hidden=256),
        # so default double-buffering costs are negligible here.
        nd = arr.ndim
        return pl.BlockSpec(arr.shape, lambda i, _nd=nd: (0,) * _nd)

    out = pl.pallas_call(
        mlp_kernel,
        out_shape=jax.ShapeDtypeStruct((B_pad, D_pad), out_dtype),
        grid_spec=pltpu.PrefetchScalarGridSpec(
            num_scalar_prefetch=0,
            grid=grid,
            in_specs=[pl.BlockSpec((tile_b, D_in), lambda i: (i, 0))] +
                     [full_spec(a) for a in flat],
            out_specs=pl.BlockSpec((tile_b, D_pad), lambda i: (i, 0)),
        ),
        compiler_params=pltpu.CompilerParams(
            dimension_semantics=("parallel",)),
    )(x, *flat)
    return out[:B, :d_out]


# ---------------------------------------------------------------------------
# Init + pure-JAX reference.
# ---------------------------------------------------------------------------
def init_linear(key, fan_in, fan_out, dtype=jnp.float32):
    """PyTorch nn.Linear-style init (uniform +/- 1/sqrt(fan_in)); weight is
    returned already transposed to [fan_in, fan_out]."""
    kw, kb = jax.random.split(key)
    bound = 1.0 / (fan_in ** 0.5)
    w = jax.random.uniform(kw, (fan_in, fan_out), dtype, minval=-bound, maxval=bound)
    b = jax.random.uniform(kb, (1, fan_out), dtype, minval=-bound, maxval=bound)
    return w, b


def reference_forward(x, params, compute_dtype=None):
    """Pure-JAX reference. If compute_dtype is set, dot operands are cast the
    same way the kernel does (tight mixed-precision comparison)."""
    cast = (lambda a: a.astype(compute_dtype)) if compute_dtype is not None else (lambda a: a)
    h = x
    n = len(params)
    for i, (w, b) in enumerate(params):
        h = jnp.dot(cast(h), cast(w), preferred_element_type=jnp.float32) + b.reshape(1, -1)
        if i < n - 1:
            h = _leaky_relu(h)
    return h


if __name__ == "__main__":
    key = jax.random.PRNGKey(0)

    # SimpleNetwork(input_dim=32, hidden_layer_dims=[256, 256, 256], output_dim=1)
    B, D_in = 16, 32
    hidden = [256, 256, 256]
    D_out = 1

    keys = jax.random.split(key, 6)
    x = jax.random.normal(keys[0], (B, D_in), jnp.float32)

    dims = [D_in] + hidden + [D_out]
    params = [init_linear(k, dims[i], dims[i + 1]) for i, k in enumerate(keys[1:5])]

    # One-time parameter prep (casts + lane padding hoisted out of the forward).
    prepared_bf16 = prepare_params(params, compute_dtype=jnp.bfloat16)
    prepared_f32 = prepare_params(params, compute_dtype=jnp.float32)

    # ---- Small batch: single-program path, bf16 operands + bf16 writeback ----
    y = jax.block_until_ready(simple_network_forward(x, prepared_bf16))
    assert y.shape == (B, D_out)
    y_ref_bf16 = reference_forward(x, params, compute_dtype=jnp.bfloat16)
    assert jnp.allclose(y.astype(jnp.float32), y_ref_bf16, atol=2e-2, rtol=2e-2), \
        "mismatch vs bf16-operand reference (small batch)"

    # ---- f32 escape hatch: full-precision operands + f32 writeback ----
    y32 = jax.block_until_ready(
        simple_network_forward(x, prepared_f32, out_dtype=jnp.float32))
    y_ref_f32 = reference_forward(x, params)
    assert jnp.allclose(y32, y_ref_f32, atol=1e-3, rtol=1e-3), \
        "mismatch vs f32 reference (parity path)"

    # ---- Larger, non-tile-multiple batch: gridded path (>= 2 programs for
    # v7x megacore), auto tile choice, zero-padded ragged tail ----
    B_big = 520
    x_big = jax.random.normal(keys[5], (B_big, D_in), jnp.float32)
    y_big = jax.block_until_ready(
        simple_network_forward(x_big, prepared_bf16, max_single_batch=256))
    assert y_big.shape == (B_big, D_out)
    y_big_ref = reference_forward(x_big, params, compute_dtype=jnp.bfloat16)
    assert jnp.allclose(y_big.astype(jnp.float32), y_big_ref, atol=2e-2, rtol=2e-2), \
        "mismatch vs bf16-operand reference (gridded path)"

    print("KERNEL_OK")
</pallas_src>

<mosaic_0001>
module attributes {stable_mosaic.version = 11 : i64} {
  func.func @mlp_kernel(%arg0: memref<16x32xf32, #tpu.memory_space<vmem>>, %arg1: memref<32x256xbf16, #tpu.memory_space<vmem>>, %arg2: memref<1x256xf32, #tpu.memory_space<vmem>>, %arg3: memref<256x256xbf16, #tpu.memory_space<vmem>>, %arg4: memref<1x256xf32, #tpu.memory_space<vmem>>, %arg5: memref<256x256xbf16, #tpu.memory_space<vmem>>, %arg6: memref<1x256xf32, #tpu.memory_space<vmem>>, %arg7: memref<256x128xbf16, #tpu.memory_space<vmem>>, %arg8: memref<1x128xf32, #tpu.memory_space<vmem>>, %arg9: memref<16x128xbf16, #tpu.memory_space<vmem>>) attributes {dimension_semantics = [], scalar_prefetch = 0 : i64, scratch_operands = 0 : i64, tpu.core_type = #tpu.core_type<tc>} {
    %c0 = arith.constant 0 : index
    %c0_0 = arith.constant 0 : index
    %0 = vector.load %arg0[%c0, %c0_0] : memref<16x32xf32, #tpu.memory_space<vmem>>, vector<16x32xf32>
    %1 = arith.truncf %0 : vector<16x32xf32> to vector<16x32xbf16>
    %c0_1 = arith.constant 0 : index
    %c0_2 = arith.constant 0 : index
    %2 = vector.load %arg1[%c0_1, %c0_2] : memref<32x256xbf16, #tpu.memory_space<vmem>>, vector<32x256xbf16>
    %cst = arith.constant dense<0.000000e+00> : vector<16x256xf32>
    %3 = tpu.matmul %1, %2, %cst {dimension_numbers = #tpu.dot_dimension_numbers<[1], [0], [0], [1], [0, 0, 1, 1], [], []>} : vector<16x32xbf16>, vector<32x256xbf16>, vector<16x256xf32> -> vector<16x256xf32>
    %c0_3 = arith.constant 0 : index
    %c0_4 = arith.constant 0 : index
    %4 = vector.load %arg2[%c0_3, %c0_4] : memref<1x256xf32, #tpu.memory_space<vmem>>, vector<1x256xf32>
    %5 = vector.broadcast %4 : vector<1x256xf32> to vector<16x256xf32>
    %6 = arith.addf %3, %5 : vector<16x256xf32>
    %cst_5 = arith.constant 0.000000e+00 : f32
    %7 = vector.broadcast %cst_5 : f32 to vector<16x256xf32>
    %8 = arith.cmpf ogt, %6, %7 : vector<16x256xf32>
    %cst_6 = arith.constant 0.00999999977 : f32
    %9 = vector.broadcast %cst_6 : f32 to vector<16x256xf32>
    %10 = arith.mulf %9, %6 : vector<16x256xf32>
    %11 = arith.select %8, %6, %10 : vector<16x256xi1>, vector<16x256xf32>
    %12 = arith.truncf %11 : vector<16x256xf32> to vector<16x256xbf16>
    %c0_7 = arith.constant 0 : index
    %c0_8 = arith.constant 0 : index
    %13 = vector.load %arg3[%c0_7, %c0_8] : memref<256x256xbf16, #tpu.memory_space<vmem>>, vector<256x256xbf16>
    %cst_9 = arith.constant dense<0.000000e+00> : vector<16x256xf32>
    %14 = tpu.matmul %12, %13, %cst_9 {dimension_numbers = #tpu.dot_dimension_numbers<[1], [0], [0], [1], [0, 0, 1, 1], [], []>} : vector<16x256xbf16>, vector<256x256xbf16>, vector<16x256xf32> -> vector<16x256xf32>
    %c0_10 = arith.constant 0 : index
    %c0_11 = arith.constant 0 : index
    %15 = vector.load %arg4[%c0_10, %c0_11] : memref<1x256xf32, #tpu.memory_space<vmem>>, vector<1x256xf32>
    %16 = vector.broadcast %15 : vector<1x256xf32> to vector<16x256xf32>
    %17 = arith.addf %14, %16 : vector<16x256xf32>
    %cst_12 = arith.constant 0.000000e+00 : f32
    %18 = vector.broadcast %cst_12 : f32 to vector<16x256xf32>
    %19 = arith.cmpf ogt, %17, %18 : vector<16x256xf32>
    %cst_13 = arith.constant 0.00999999977 : f32
    %20 = vector.broadcast %cst_13 : f32 to vector<16x256xf32>
    %21 = arith.mulf %20, %17 : vector<16x256xf32>
    %22 = arith.select %19, %17, %21 : vector<16x256xi1>, vector<16x256xf32>
    %23 = arith.truncf %22 : vector<16x256xf32> to vector<16x256xbf16>
    %c0_14 = arith.constant 0 : index
    %c0_15 = arith.constant 0 : index
    %24 = vector.load %arg5[%c0_14, %c0_15] : memref<256x256xbf16, #tpu.memory_space<vmem>>, vector<256x256xbf16>
    %cst_16 = arith.constant dense<0.000000e+00> : vector<16x256xf32>
    %25 = tpu.matmul %23, %24, %cst_16 {dimension_numbers = #tpu.dot_dimension_numbers<[1], [0], [0], [1], [0, 0, 1, 1], [], []>} : vector<16x256xbf16>, vector<256x256xbf16>, vector<16x256xf32> -> vector<16x256xf32>
    %c0_17 = arith.constant 0 : index
    %c0_18 = arith.constant 0 : index
    %26 = vector.load %arg6[%c0_17, %c0_18] : memref<1x256xf32, #tpu.memory_space<vmem>>, vector<1x256xf32>
    %27 = vector.broadcast %26 : vector<1x256xf32> to vector<16x256xf32>
    %28 = arith.addf %25, %27 : vector<16x256xf32>
    %cst_19 = arith.constant 0.000000e+00 : f32
    %29 = vector.broadcast %cst_19 : f32 to vector<16x256xf32>
    %30 = arith.cmpf ogt, %28, %29 : vector<16x256xf32>
    %cst_20 = arith.constant 0.00999999977 : f32
    %31 = vector.broadcast %cst_20 : f32 to vector<16x256xf32>
    %32 = arith.mulf %31, %28 : vector<16x256xf32>
    %33 = arith.select %30, %28, %32 : vector<16x256xi1>, vector<16x256xf32>
    %34 = arith.truncf %33 : vector<16x256xf32> to vector<16x256xbf16>
    %c0_21 = arith.constant 0 : index
    %c0_22 = arith.constant 0 : index
    %35 = vector.load %arg7[%c0_21, %c0_22] : memref<256x128xbf16, #tpu.memory_space<vmem>>, vector<256x128xbf16>
    %cst_23 = arith.constant dense<0.000000e+00> : vector<16x128xf32>
    %36 = tpu.matmul %34, %35, %cst_23 {dimension_numbers = #tpu.dot_dimension_numbers<[1], [0], [0], [1], [0, 0, 1, 1], [], []>} : vector<16x256xbf16>, vector<256x128xbf16>, vector<16x128xf32> -> vector<16x128xf32>
    %c0_24 = arith.constant 0 : index
    %c0_25 = arith.constant 0 : index
    %37 = vector.load %arg8[%c0_24, %c0_25] : memref<1x128xf32, #tpu.memory_space<vmem>>, vector<1x128xf32>
    %38 = vector.broadcast %37 : vector<1x128xf32> to vector<16x128xf32>
    %39 = arith.addf %36, %38 : vector<16x128xf32>
    %40 = arith.truncf %39 : vector<16x128xf32> to vector<16x128xbf16>
    %c0_26 = arith.constant 0 : index
    %c0_27 = arith.constant 0 : index
    %41 = vector.load %arg9[%c0_26, %c0_27] : memref<16x128xbf16, #tpu.memory_space<vmem>>, vector<16x128xbf16>
    tpu.vector_store %arg9[%c0_26, %c0_27], %40 {strides = array<i32>} : memref<16x128xbf16, #tpu.memory_space<vmem>>, vector<16x128xbf16>,
    return
  }
}

</mosaic_0001>

<bundles_post_ra>
// kernel: tpu_custom_call.1
= control target key start
LH: loop header
LB: loop body
LE: loop exit
PB: predicated region body
PF: predicated region fallthrough
CT: control target
= control target key end

     0   :  { %14 = vsyncpa [#allocation3], 0  ;;  %s1502_s0 = inlined_call_operand.hbm [shape: f32[16,32], index: 0, kind: input, shape index: {}]   ;;  %s1503_s1 = inlined_call_operand.hbm [shape: bf16[32,256], index: 1, kind: input, shape index: {}]   ;;  %s1504_s2 = inlined_call_operand.vmem [shape: f32[1,256], index: 2, kind: input, shape index: {}]   ;;  %s1505_s3 = inlined_call_operand.hbm [shape: bf16[256,256], index: 3, kind: input, shape index: {}]   ;;  %s1506_s4 = inlined_call_operand.vmem [shape: f32[1,256], index: 4, kind: input, shape index: {}]   ;;  %s1507_s5 = inlined_call_operand.hbm [shape: bf16[256,256], index: 5, kind: input, shape index: {}]   ;;  %s1508_s6 = inlined_call_operand.vmem [shape: f32[1,256], index: 6, kind: input, shape index: {}]   ;;  %s1509_s7 = inlined_call_operand.hbm [shape: bf16[256,128], index: 7, kind: input, shape index: {}]   ;;  %s1510_s8 = inlined_call_operand.vmem [shape: f32[1,128], index: 8, kind: input, shape index: {}]   ;;  %s1511_s9 = inlined_call_operand.hbm [shape: bf16[16,128], index: 9, kind: output, shape index: {}]  }
   0x1   :  { %15 = vsyncpa [#allocation6], 0 }
   0x2   :  { %16 = vsyncpa [#allocation9], 0 }
   0x3   :  { %17 = vsyncpa [#allocation4], 0  ;;  %s1315_s30 = smov [#allocation5]   ;;  %s1316_s11 = smov [#allocation8]  }
   0x4   :  { %s35_s10 = sshll.u32 %s1315_s30, 4  ;;  %s63_s12 = sshll.u32 %s1316_s11, 4  ;;  %s36_s10 = int_to_ptr.vmem [resolvable:$true] %s35_s10  ;;  %s1376_s12 = int_to_ptr.vmem [resolvable:$true] %s63_s12 }
   0x5   :  { %s1175_s15 = scalar_lea.hbm %s1503_s1, 512 }
   0x6   :  { %p1176_p0 = scmp.ne.s32.totalorder %s1503_s1, %s1175_s15  ;;  %p1179_p1 = scmp.lt.u32.totalorder %s1175_s15, %s1503_s1 }
   0x8   :  { %p1181_p2 = pnand %p1179_p1, %p1176_p0 }
   0xa   :  { %1184 = shalt.err (!%p1181_p2)
}
   0xb   :  { %s1185_s20 = scalar_lea.vmem %s36_s10, 512  ;;  %p1190_p4 = scmp.lt.s32.totalorder %s36_s10, %s36_s10 }
   0xc   :  { %p1186_p3 = scmp.ne.s32.totalorder %s36_s10, %s1185_s20  ;;  %p1191_p5 = scmp.lt.s32.totalorder %s1185_s20, %s1185_s20 }
   0xe   :  { %p1192_p6 = por %p1191_p5, %p1190_p4 }
  0x10   :  { %p1193_p7 = pnand %p1192_p6, %p1186_p3 }
  0x12   :  { %1196 = shalt.err (!%p1193_p7)
}
  0x13   :  { %s1317_s21 = smov 128   ;;  %s1318_s22 = smov 8  }
  0x14   :  { %41 = dma.hbm_to_vmem [thread:$0]  %s1503_s1, 512, %s36_s10, [#allocation6], %s1317_s21, %s1317_s21, %s1318_s22  }
  0x15   :  { %s1197_s27 = scalar_lea.hbm %s1507_s5, 4096 }
  0x16   :  { %p1198_p8 = scmp.ne.s32.totalorder %s1507_s5, %s1197_s27  ;;  %p1201_p9 = scmp.lt.u32.totalorder %s1197_s27, %s1507_s5 }
  0x18   :  { %p1203_p10 = pnand %p1201_p9, %p1198_p8 }
  0x1a   :  { %1206 = shalt.err (!%p1203_p10)
}
  0x1b   :  { %s1207_s13 = scalar_lea.vmem %s1376_s12, 4096  ;;  %p1212_p12 = scmp.lt.s32.totalorder %s1376_s12, %s1376_s12 }
  0x1c   :  { %p1208_p11 = scmp.ne.s32.totalorder %s1376_s12, %s1207_s13  ;;  %p1213_p13 = scmp.lt.s32.totalorder %s1207_s13, %s1207_s13 }
  0x1e   :  { %p1214_p0 = por %p1213_p13, %p1212_p12 }
  0x20   :  { %p1215_p1 = pnand %p1214_p0, %p1208_p11 }
  0x22   :  { %1218 = shalt.err (!%p1215_p1)
}
  0x23   :  { %69 = dma.hbm_to_vmem [thread:$0]  %s1507_s5, 4096, %s1376_s12, [#allocation9], %s1317_s21, %s1317_s21, %s1318_s22  }
  0x24   :  { %s1319_s14 = smov [#allocation2]   ;;  %s1320_s16 = smov [#allocation7]  }
  0x25   :  { %s23_s15 = sshll.u32 %s1319_s14, 4  ;;  %s49_s17 = sshll.u32 %s1320_s16, 4  ;;  %s24_s15 = int_to_ptr.vmem [resolvable:$true] %s23_s15  ;;  %s1413_s17 = int_to_ptr.vmem [resolvable:$true] %s49_s17 }
  0x26   :  { %s1219_s20 = scalar_lea.hbm %s1502_s0, 256 }
  0x27   :  { %p1220_p2 = scmp.ne.s32.totalorder %s1502_s0, %s1219_s20  ;;  %p1223_p3 = scmp.lt.u32.totalorder %s1219_s20, %s1502_s0 }
  0x29   :  { %p1225_p4 = pnand %p1223_p3, %p1220_p2 }
  0x2b   :  { %1228 = shalt.err (!%p1225_p4)
}
  0x2c   :  { %s1229_s5 = scalar_lea.vmem %s24_s15, 256  ;;  %p1234_p6 = scmp.lt.s32.totalorder %s24_s15, %s24_s15 }
  0x2d   :  { %p1230_p5 = scmp.ne.s32.totalorder %s24_s15, %s1229_s5  ;;  %p1235_p7 = scmp.lt.s32.totalorder %s1229_s5, %s1229_s5 }
  0x2f   :  { %p1236_p8 = por %p1235_p7, %p1234_p6 }
  0x31   :  { %p1237_p9 = pnand %p1236_p8, %p1230_p5 }
  0x33   :  { %1240 = shalt.err (!%p1237_p9)
}
  0x34   :  { %29 = dma.hbm_to_vmem [thread:$0]  %s1502_s0, 256, %s24_s15, [#allocation3], %s1317_s21, %s1317_s21, %s1318_s22  }
  0x35   :  { %s1241_s30 = scalar_lea.hbm %s1505_s3, 4096 }
  0x36   :  { %p1242_p10 = scmp.ne.s32.totalorder %s1505_s3, %s1241_s30  ;;  %p1245_p11 = scmp.lt.u32.totalorder %s1241_s30, %s1505_s3 }
  0x38   :  { %p1247_p12 = pnand %p1245_p11, %p1242_p10 }
  0x3a   :  { %1250 = shalt.err (!%p1247_p12)
}
  0x3b   :  { %s1251_s14 = scalar_lea.vmem %s1413_s17, 4096  ;;  %p1256_p0 = scmp.lt.s32.totalorder %s1413_s17, %s1413_s17 }
  0x3c   :  { %p1252_p13 = scmp.ne.s32.totalorder %s1413_s17, %s1251_s14  ;;  %p1257_p1 = scmp.lt.s32.totalorder %s1251_s14, %s1251_s14 }
  0x3e   :  { %p1258_p2 = por %p1257_p1, %p1256_p0 }
  0x40   :  { %p1259_p3 = pnand %p1258_p2, %p1252_p13 }
  0x42   :  { %1262 = shalt.err (!%p1259_p3)
}
  0x43   :  { %55 = dma.hbm_to_vmem [thread:$0]  %s1505_s3, 4096, %s1413_s17, [#allocation6], %s1317_s21, %s1317_s21, %s1318_s22  }
  0x44   :  { %s1321_s16 = smov [#allocation10]   ;;  %s1263_s23 = scalar_lea.hbm %s1509_s7, 2048 }
  0x45   :  { %s77_s18 = sshll.u32 %s1321_s16, 4  ;;  %p1264_p4 = scmp.ne.s32.totalorder %s1509_s7, %s1263_s23  ;;  %s78_s18 = int_to_ptr.vmem [resolvable:$true] %s77_s18 }
  0x46   :  { %p1267_p5 = scmp.lt.u32.totalorder %s1263_s23, %s1509_s7 }
  0x48   :  { %p1269_p6 = pnand %p1267_p5, %p1264_p4 }
  0x4a   :  { %1272 = shalt.err (!%p1269_p6)
}
  0x4b   :  { %s1273_s12 = scalar_lea.vmem %s78_s18, 2048  ;;  %p1278_p8 = scmp.lt.s32.totalorder %s78_s18, %s78_s18 }
  0x4c   :  { %p1274_p7 = scmp.ne.s32.totalorder %s78_s18, %s1273_s12  ;;  %p1279_p9 = scmp.lt.s32.totalorder %s1273_s12, %s1273_s12 }
  0x4e   :  { %p1280_p10 = por %p1279_p9, %p1278_p8 }
  0x50   :  { %p1281_p11 = pnand %p1280_p10, %p1274_p7 }
  0x52   :  { %1284 = shalt.err (!%p1281_p11)
}
  0x53   :  { %s1322_s3 = smov 64   ;;  %s1323_s21 = smov 4  }
  0x54   :  { %83 = dma.hbm_to_vmem [thread:$0]  %s1509_s7, 2048, %s78_s18, [#allocation9], %s1322_s3, %s1322_s3, %s1323_s21  }
  0x55   :  { %1307 = dma.done.wait [#allocation3], 256  }
  0x56   :  { %1308 = vsyncadd [#allocation3], 4294967040 }
  0x57   :  { %1309 = dma.done.wait [#allocation6], 4608  }
  0x58   :  { %1310 = vsyncadd [#allocation6], 4294962688 }
  0x59   :  { %1311 = dma.done.wait [#allocation9], 6144  }
  0x5a   :  { %1312 = vsyncadd [#allocation9], 4294961152  ;;  %v1324_v0 = vmov 0   ;;  %v1057_v1 = vld [vmem:[#allocation5 + $0x4] ss:$8 sps:$4 sm:$0xff]   ;;  %v102_v5 = vld [vmem:[#allocation2] sm:$0xff] }
  0x5b   :  { %177 = vmatprep.mubr.bf16.mxu0 %v1324_v0  ;;  %v1059_v2 = vld [vmem:[#allocation5] ss:$8 sps:$4 sm:$0xff]   ;;  %145 = vmatprep.subr.bf16.mxu0 %v1057_v1  ;;  %v1060_v3 = vld [vmem:[#allocation5 + $0x14] ss:$8 sps:$4 sm:$0xff]   ;;  %v1062_v4 = vld [vmem:[#allocation5 + $0x10] ss:$8 sps:$4 sm:$0xff]  }
  0x5c   :  { %146 = vmatpush1.bf16.msra.mxu0 %v1059_v2  ;;  %v103_v6 = vld [vmem:[#allocation2 + $0x8] sm:$0xff]  ;;  %v1063_v7 = vld [vmem:[#allocation7 + $0x4] ss:$8 sps:$4 sm:$0xff]   ;;  %v1065_v8 = vld [vmem:[#allocation7] ss:$8 sps:$4 sm:$0xff]   ;;  %vm141_vm0 = vcmask 261120   ;;  %v111_v2 = vlaneseq }
  0x5d   :  { %147 = vmatprep.subr.bf16.mxu0 %v1060_v3  ;;  %v1066_v9 = vld [vmem:[#allocation7 + $0x14] ss:$8 sps:$4 sm:$0xff]   ;;  %v104_v10 = vpack.c.bf16 %v103_v6, %v102_v5  ;;  %406 = vmatprep.subr.bf16.mxu1 %v1063_v7  ;;  %v1068_v11 = vld [vmem:[#allocation7 + $0x10] ss:$8 sps:$4 sm:$0xff]   ;;  %v1069_v12 = vld [vmem:[#allocation7 + $0x24] ss:$8 sps:$4 sm:$0xff]  }
  0x5e   :  { %407 = vmatpush1.bf16.msra.mxu1 %v1065_v8  ;;  %v1071_v13 = vld [vmem:[#allocation7 + $0x20] ss:$8 sps:$4 sm:$0xff]   ;;  %v1072_v14 = vld [vmem:[#allocation7 + $0x34] ss:$8 sps:$4 sm:$0xff]   ;;  %v1074_v15 = vld [vmem:[#allocation7 + $0x30] ss:$8 sps:$4 sm:$0xff]  }
  0x5f   :  { %408 = vmatprep.subr.bf16.mxu1 %v1066_v9  ;;  %v1075_v16 = vld [vmem:[#allocation7 + $0x44] ss:$8 sps:$4 sm:$0xff]   ;;  %v1077_v17 = vld [vmem:[#allocation7 + $0x40] ss:$8 sps:$4 sm:$0xff]   ;;  %v1078_v18 = vld [vmem:[#allocation7 + $0x54] ss:$8 sps:$4 sm:$0xff]  }
  0x60   :  { %148 = vmatpush1.bf16.msra.mxu0 %v1062_v4  ;;  %v1080_v19 = vld [vmem:[#allocation7 + $0x50] ss:$8 sps:$4 sm:$0xff]   ;;  %v1081_v20 = vld [vmem:[#allocation7 + $0x64] ss:$8 sps:$4 sm:$0xff]   ;;  %v1083_v21 = vld [vmem:[#allocation7 + $0x60] ss:$8 sps:$4 sm:$0xff]  }
  0x61   :  { %v1084_v22 = vld [vmem:[#allocation7 + $0x74] ss:$8 sps:$4 sm:$0xff]   ;;  %v1086_v23 = vld [vmem:[#allocation7 + $0x70] ss:$8 sps:$4 sm:$0xff]   ;;  %v1087_v24 = vld [vmem:[#allocation7 + $0x84] ss:$8 sps:$4 sm:$0xff]  }
  0x62   :  { %409 = vmatpush1.bf16.msra.mxu1 %v1068_v11  ;;  %v1089_v25 = vld [vmem:[#allocation7 + $0x80] ss:$8 sps:$4 sm:$0xff]   ;;  %v1090_v26 = vld [vmem:[#allocation7 + $0x94] ss:$8 sps:$4 sm:$0xff]   ;;  %v1092_v27 = vld [vmem:[#allocation7 + $0x90] ss:$8 sps:$4 sm:$0xff]  }
  0x63   :  { %933 = vmatmul.mubr.msk.bf16.vlgmr.msra.gmra.mrb[0].mxu0 %vm141_vm0, %v104_v10  ;;  %410 = vmatprep.subr.bf16.mxu1 %v1069_v12  ;;  %v1093_v28 = vld [vmem:[#allocation7 + $0xa4] ss:$8 sps:$4 sm:$0xff]   ;;  %v1095_v29 = vld [vmem:[#allocation7 + $0xa0] ss:$8 sps:$4 sm:$0xff]   ;;  %v1096_v30 = vld [vmem:[#allocation7 + $0xb4] ss:$8 sps:$4 sm:$0xff]  }
  0x64   :  { %v1098_v31 = vld [vmem:[#allocation7 + $0xb0] ss:$8 sps:$4 sm:$0xff]   ;;  %v1099_v32 = vld [vmem:[#allocation7 + $0xc4] ss:$8 sps:$4 sm:$0xff]   ;;  %v1101_v33 = vld [vmem:[#allocation7 + $0xc0] ss:$8 sps:$4 sm:$0xff]  }
  0x65   :  { %v1102_v34 = vld [vmem:[#allocation7 + $0xd4] ss:$8 sps:$4 sm:$0xff]   ;;  %v1104_v35 = vld [vmem:[#allocation7 + $0xd0] ss:$8 sps:$4 sm:$0xff]   ;;  %v1105_v36 = vld [vmem:[#allocation7 + $0xe4] ss:$8 sps:$4 sm:$0xff]  }
  0x66   :  { %411 = vmatpush1.bf16.msra.mxu1 %v1071_v13  ;;  %v1107_v37 = vld [vmem:[#allocation7 + $0xe0] ss:$8 sps:$4 sm:$0xff]   ;;  %v1108_v38 = vld [vmem:[#allocation7 + $0xf4] ss:$8 sps:$4 sm:$0xff]   ;;  %v1110_v39 = vld [vmem:[#allocation7 + $0xf0] ss:$8 sps:$4 sm:$0xff]  }
  0x67   :  { %412 = vmatprep.subr.bf16.mxu1 %v1072_v14  ;;  %v1111_v40 = vld [vmem:[#allocation8] ss:$8 sps:$4 sm:$0xff]   ;;  %v1113_v41 = vld [vmem:[#allocation8 + $0x4] ss:$8 sps:$4 sm:$0xff]   ;;  %v1116_v42 = vld [vmem:[#allocation8 + $0x14] ss:$8 sps:$4 sm:$0xff]  }
  0x68   :  { %667 = vmatprep.subr.bf16.mxu0 %v1113_v41  ;;  %v1114_v43 = vld [vmem:[#allocation8 + $0x10] ss:$8 sps:$4 sm:$0xff]   ;;  %v1119_v44 = vld [vmem:[#allocation8 + $0x24] ss:$8 sps:$4 sm:$0xff]   ;;  %v1117_v45 = vld [vmem:[#allocation8 + $0x20] ss:$8 sps:$4 sm:$0xff]  }
  0x69   :  { %668 = vmatpush1.bf16.msra.mxu0 %v1111_v40  ;;  %v1122_v46 = vld [vmem:[#allocation8 + $0x34] ss:$8 sps:$4 sm:$0xff]   ;;  %v1120_v47 = vld [vmem:[#allocation8 + $0x30] ss:$8 sps:$4 sm:$0xff]   ;;  %v1125_v48 = vld [vmem:[#allocation8 + $0x44] ss:$8 sps:$4 sm:$0xff]  }
  0x6a   :  { %413 = vmatpush1.bf16.msra.mxu1 %v1074_v15  ;;  %669 = vmatprep.subr.bf16.mxu0 %v1116_v42  ;;  %v1123_v49 = vld [vmem:[#allocation8 + $0x40] ss:$8 sps:$4 sm:$0xff]   ;;  %v1128_v50 = vld [vmem:[#allocation8 + $0x54] ss:$8 sps:$4 sm:$0xff]   ;;  %v1126_v51 = vld [vmem:[#allocation8 + $0x50] ss:$8 sps:$4 sm:$0xff]  }
  0x6b   :  { %414 = vmatprep.subr.bf16.mxu1 %v1075_v16  ;;  %v1131_v52 = vld [vmem:[#allocation8 + $0x64] ss:$8 sps:$4 sm:$0xff]   ;;  %v1129_v53 = vld [vmem:[#allocation8 + $0x60] ss:$8 sps:$4 sm:$0xff]   ;;  %v1134_v54 = vld [vmem:[#allocation8 + $0x74] ss:$8 sps:$4 sm:$0xff]  }
  0x6c   :  { %v1132_v55 = vld [vmem:[#allocation8 + $0x70] ss:$8 sps:$4 sm:$0xff]   ;;  %v1137_v56 = vld [vmem:[#allocation8 + $0x84] ss:$8 sps:$4 sm:$0xff]   ;;  %v1135_v57 = vld [vmem:[#allocation8 + $0x80] ss:$8 sps:$4 sm:$0xff]  }
  0x6d   :  { %670 = vmatpush1.bf16.msra.mxu0 %v1114_v43  ;;  %v1140_v58 = vld [vmem:[#allocation8 + $0x94] ss:$8 sps:$4 sm:$0xff]   ;;  %v1138_v59 = vld [vmem:[#allocation8 + $0x90] ss:$8 sps:$4 sm:$0xff]   ;;  %v1143_v60 = vld [vmem:[#allocation8 + $0xa4] ss:$8 sps:$4 sm:$0xff]  }
  0x6e   :  { %415 = vmatpush1.bf16.msra.mxu1 %v1077_v17  ;;  %671 = vmatprep.subr.bf16.mxu0 %v1119_v44  ;;  %v1141_v61 = vld [vmem:[#allocation8 + $0xa0] ss:$8 sps:$4 sm:$0xff]   ;;  %v1146_v62 = vld [vmem:[#allocation8 + $0xb4] ss:$8 sps:$4 sm:$0xff]   ;;  %v1144_v63 = vld [vmem:[#allocation8 + $0xb0] ss:$8 sps:$4 sm:$0xff]  }
  0x6f   :  { %416 = vmatprep.subr.bf16.mxu1 %v1078_v18  ;;  %v1149_v0 = vld [vmem:[#allocation8 + $0xc4] ss:$8 sps:$4 sm:$0xff]   ;;  %v1147_v1 = vld [vmem:[#allocation8 + $0xc0] ss:$8 sps:$4 sm:$0xff]   ;;  %v112_v3 = vshrl.u32 %v111_v2, 7  ;;  %v1166_v40 = vld [vmem:[#allocation10 + $0x18] sm:$0xff]  }
  0x70   :  { %v109_v5 = vld [vmem:[%s1504_s2] sm:$0x3]  ;;  %v1167_v41 = vld [vmem:[#allocation10 + $0x60] sm:$0xff]   ;;  %s1325_s11 = smov [#allocation11]  }
  0x71   :  { %672 = vmatpush1.bf16.msra.mxu0 %v1117_v45  ;;  %v1465_v4 = vsub.s32 0, %v112_v3  ;;  %v1470_v6 = vsub.s32 1, %v112_v3  ;;  %v1168_v42 = vld [vmem:[#allocation10 + $0x20] sm:$0xff]   ;;  %v234_v43 = vld [vmem:[%s1506_s4] sm:$0x3]  ;;  %s915_s13 = sshll.u32 %s1325_s11, 4  ;;  %s916_s13 = int_to_ptr.vmem [resolvable:$true] %s915_s13 }
  0x72   :  { %417 = vmatpush1.bf16.msra.mxu1 %v1080_v19  ;;  %673 = vmatprep.subr.bf16.mxu0 %v1122_v46  ;;  %v1171_v2 = vld [vmem:[#allocation10 + $0x70] sm:$0xff]   ;;  %s1285_s1 = scalar_lea.vmem %s916_s13, 128  ;;  %p1290_p13 = scmp.lt.s32.totalorder %s916_s13, %s916_s13 }
  0x73   :  { %418 = vmatprep.subr.bf16.mxu1 %v1081_v20  ;;  %v114_v7 = vrot.slane %v109_v5, %v1465_v4  ;;  %v118_v8 = vrot.slane %v109_v5, %v1470_v6  ;;  %v239_v44 = vrot.slane %v234_v43, %v1465_v4  ;;  %v243_v45 = vrot.slane %v234_v43, %v1470_v6  ;;  %v1172_v3 = vld [vmem:[#allocation10 + $0x30] sm:$0xff]   ;;  %v1173_v5 = vld [vmem:[#allocation10 + $0x78] sm:$0xff]   ;;  %p1286_p12 = scmp.ne.s32.totalorder %s916_s13, %s1285_s1  ;;  %p1291_p0 = scmp.lt.s32.totalorder %s1285_s1, %s1285_s1 }
  0x75   :  { %674 = vmatpush1.bf16.msra.mxu0 %v1120_v47  ;;  %p1292_p1 = por %p1291_p0, %p1290_p13 }
  0x76   :  { %419 = vmatpush1.bf16.msra.mxu1 %v1083_v21  ;;  %675 = vmatprep.subr.bf16.mxu0 %v1125_v48 }
  0x77   :  { %420 = vmatprep.subr.bf16.mxu1 %v1084_v22  ;;  %p1293_p2 = pnand %p1292_p1, %p1286_p12 }
  0x79   :  { %676 = vmatpush1.bf16.msra.mxu0 %v1123_v49 }
  0x7a   :  { %421 = vmatpush1.bf16.msra.mxu1 %v1086_v23  ;;  %677 = vmatprep.subr.bf16.mxu0 %v1128_v50 }
  0x7b   :  { %422 = vmatprep.subr.bf16.mxu1 %v1087_v24 }
  0x7d   :  { %678 = vmatpush1.bf16.msra.mxu0 %v1126_v51 }
  0x7e   :  { %423 = vmatpush1.bf16.msra.mxu1 %v1089_v25  ;;  %679 = vmatprep.subr.bf16.mxu0 %v1131_v52 }
  0x7f   :  { %424 = vmatprep.subr.bf16.mxu1 %v1090_v26 }
  0x81   :  { %680 = vmatpush1.bf16.msra.mxu0 %v1129_v53 }
  0x82   :  { %425 = vmatpush1.bf16.msra.mxu1 %v1092_v27  ;;  %681 = vmatprep.subr.bf16.mxu0 %v1134_v54  ;;  %v1152_v27 = vld [vmem:[#allocation8 + $0xd4] ss:$8 sps:$4 sm:$0xff]  }
  0x83   :  { %426 = vmatprep.subr.bf16.mxu1 %v1093_v28  ;;  %v1150_v28 = vld [vmem:[#allocation8 + $0xd0] ss:$8 sps:$4 sm:$0xff]  }
  0x85   :  { %682 = vmatpush1.bf16.msra.mxu0 %v1132_v55 }
  0x86   :  { %427 = vmatpush1.bf16.msra.mxu1 %v1095_v29  ;;  %683 = vmatprep.subr.bf16.mxu0 %v1137_v56  ;;  %v1155_v29 = vld [vmem:[#allocation8 + $0xe4] ss:$8 sps:$4 sm:$0xff]  }
  0x87   :  { %428 = vmatprep.subr.bf16.mxu1 %v1096_v30  ;;  %v1153_v30 = vld [vmem:[#allocation8 + $0xe0] ss:$8 sps:$4 sm:$0xff]  }
  0x89   :  { %684 = vmatpush1.bf16.msra.mxu0 %v1135_v57 }
  0x8a   :  { %429 = vmatpush1.bf16.msra.mxu1 %v1098_v31  ;;  %685 = vmatprep.subr.bf16.mxu0 %v1140_v58  ;;  %v1158_v31 = vld [vmem:[#allocation8 + $0xf4] ss:$8 sps:$4 sm:$0xff]  }
  0x8b   :  { %430 = vmatprep.subr.bf16.mxu1 %v1099_v32  ;;  %v1156_v32 = vld [vmem:[#allocation8 + $0xf0] ss:$8 sps:$4 sm:$0xff]  }
  0x8d   :  { %686 = vmatpush1.bf16.msra.mxu0 %v1138_v59 }
  0x8e   :  { %431 = vmatpush1.bf16.msra.mxu1 %v1101_v33  ;;  %687 = vmatprep.subr.bf16.mxu0 %v1143_v60  ;;  %v1159_v33 = vld [vmem:[#allocation10 + $0x40] sm:$0xff]  }
  0x8f   :  { %432 = vmatprep.subr.bf16.mxu1 %v1102_v34  ;;  %v1160_v34 = vld [vmem:[#allocation10] sm:$0xff]  }
  0x91   :  { %688 = vmatpush1.bf16.msra.mxu0 %v1141_v61 }
  0x92   :  { %433 = vmatpush1.bf16.msra.mxu1 %v1104_v35  ;;  %689 = vmatprep.subr.bf16.mxu0 %v1146_v62  ;;  %v1161_v35 = vld [vmem:[#allocation10 + $0x48] sm:$0xff]  }
  0x93   :  { %434 = vmatprep.subr.bf16.mxu1 %v1105_v36  ;;  %v1162_v36 = vld [vmem:[#allocation10 + $0x8] sm:$0xff]  }
  0x95   :  { %690 = vmatpush1.bf16.msra.mxu0 %v1144_v63 }
  0x96   :  { %435 = vmatpush1.bf16.msra.mxu1 %v1107_v37  ;;  %691 = vmatprep.subr.bf16.mxu0 %v1149_v0  ;;  %v1163_v37 = vld [vmem:[#allocation10 + $0x50] sm:$0xff]   ;;  %v1169_v0 = vld [vmem:[#allocation10 + $0x68] sm:$0xff]  }
  0x97   :  { %436 = vmatprep.subr.bf16.mxu1 %v1108_v38  ;;  %v1164_v38 = vld [vmem:[#allocation10 + $0x10] sm:$0xff]  }
  0x99   :  { %692 = vmatpush1.bf16.msra.mxu0 %v1147_v1  ;;  %v1170_v1 = vld [vmem:[#allocation10 + $0x28] sm:$0xff]  }
  0x9a   :  { %437 = vmatpush1.bf16.msra.mxu1 %v1110_v39  ;;  %693 = vmatprep.subr.bf16.mxu0 %v1152_v27  ;;  %v1165_v39 = vld [vmem:[#allocation10 + $0x58] sm:$0xff]  }
  0x9b   :  { %1024 = vmatprep.subr.bf16.mxu1 %v1159_v33 }
  0x9d   :  { %694 = vmatpush1.bf16.msra.mxu0 %v1150_v28 }
  0x9e   :  { %695 = vmatprep.subr.bf16.mxu0 %v1155_v29 }
  0xa1   :  { %696 = vmatpush1.bf16.msra.mxu0 %v1153_v30 }
  0xa2   :  { %697 = vmatprep.subr.bf16.mxu0 %v1158_v31  ;;  %v998_v31 = vld [vmem:[%s1510_s8] ss:$0 sm:$0xff] }
  0xa5   :  { %698 = vmatpush1.bf16.msra.mxu0 %v1156_v32 }
 0x136   :  { %v179_v9 = vpop.f32.mrb[0].mxu0 }
 0x137   :  { %v180_v10 = vadd.f32 %v179_v9, %v114_v7  ;;  %v181_v11 = vpop.f32.mrb[1].mxu0 }
 0x138   :  { %v182_v12 = vadd.f32 %v181_v11, %v118_v8  ;;  %v183_v13 = vpop.f32.mrb[2].mxu0 }
 0x139   :  { %v192_v14 = vmul.f32 0.01, %v180_v10  ;;  %v184_v15 = vadd.f32 %v183_v13, %v114_v7  ;;  %v185_v16 = vpop.f32.mrb[3].mxu0  ;;  %vm188_vm1 = vcmp.gt.f32.partialorder %v180_v10, 0.0  ;;  %v1174_v7 = vld [vmem:[#allocation10 + $0x38] sm:$0xff]  }
 0x13a   :  { %v193_v17 = vmul.f32 0.01, %v182_v12  ;;  %v186_v18 = vadd.f32 %v185_v16, %v118_v8  ;;  %vm189_vm3 = vcmp.gt.f32.partialorder %v182_v12, 0.0  ;;  %v495_v8 = vld [vmem:[%s1508_s6] sm:$0x3] }
 0x13b   :  { %vm190_vm2 = vcmp.gt.f32.partialorder %v184_v15, 0.0  ;;  %v194_v19 = vmul.f32 0.01, %v184_v15  ;;  %v196_v21 = vsel %vm188_vm1, %v180_v10, %v192_v14  ;;  %v500_v9 = vrot.slane %v495_v8, %v1465_v4 }
 0x13c   :  { %v195_v20 = vmul.f32 0.01, %v186_v18  ;;  %vm191_vm4 = vcmp.gt.f32.partialorder %v186_v18, 0.0  ;;  %v197_v23 = vsel %vm189_vm3, %v182_v12, %v193_v17  ;;  %v504_v10 = vrot.slane %v495_v8, %v1470_v6 }
 0x13d   :  { %v198_v22 = vsel %vm190_vm2, %v184_v15, %v194_v19 }
 0x13e   :  { %v199_v24 = vsel %vm191_vm4, %v186_v18, %v195_v20  ;;  %v200_v25 = vpack.c.bf16 %v198_v22, %v196_v21 }
 0x13f   :  { %v201_v26 = vpack.c.bf16 %v199_v24, %v197_v23 }
 0x141   :  { %438 = vmatprep.mubr.bf16.mxu1 %v201_v26 }
 0x142   :  { %439 = vmatmul.mubr.bf16.vlgmr.msra.gmra.mrb[0].mxu1 %v200_v25 }
 0x143   :  { %1025 = vmatpush3.bf16.msra.mxu1 %v1160_v34 }
 0x144   :  { %1026 = vmatprep.subr.bf16.mxu1 %v1161_v35 }
 0x147   :  { %1027 = vmatpush3.bf16.msra.mxu1 %v1162_v36 }
 0x148   :  { %1028 = vmatprep.subr.bf16.mxu1 %v1163_v37 }
 0x14b   :  { %1029 = vmatpush3.bf16.msra.mxu1 %v1164_v38 }
 0x14c   :  { %1030 = vmatprep.subr.bf16.mxu1 %v1165_v39 }
 0x14f   :  { %1031 = vmatpush3.bf16.msra.mxu1 %v1166_v40 }
 0x150   :  { %1032 = vmatprep.subr.bf16.mxu1 %v1167_v41 }
 0x153   :  { %1033 = vmatpush3.bf16.msra.mxu1 %v1168_v42 }
 0x154   :  { %1034 = vmatprep.subr.bf16.mxu1 %v1169_v0 }
 0x157   :  { %1035 = vmatpush3.bf16.msra.mxu1 %v1170_v1 }
 0x158   :  { %1036 = vmatprep.subr.bf16.mxu1 %v1171_v2 }
 0x15b   :  { %1037 = vmatpush3.bf16.msra.mxu1 %v1172_v3 }
 0x15c   :  { %1038 = vmatprep.subr.bf16.mxu1 %v1173_v5 }
 0x15f   :  { %1039 = vmatpush3.bf16.msra.mxu1 %v1174_v7 }
 0x215   :  { %v440_v46 = vpop.f32.mrb[0].mxu1 }
 0x216   :  { %v441_v47 = vadd.f32 %v440_v46, %v239_v44  ;;  %v442_v48 = vpop.f32.mrb[1].mxu1 }
 0x217   :  { %v443_v49 = vadd.f32 %v442_v48, %v243_v45  ;;  %v444_v50 = vpop.f32.mrb[2].mxu1 }
 0x218   :  { %v453_v51 = vmul.f32 0.01, %v441_v47  ;;  %v445_v52 = vadd.f32 %v444_v50, %v239_v44  ;;  %v446_v53 = vpop.f32.mrb[3].mxu1  ;;  %vm449_vm5 = vcmp.gt.f32.partialorder %v441_v47, 0.0 }
 0x219   :  { %v454_v54 = vmul.f32 0.01, %v443_v49  ;;  %v447_v55 = vadd.f32 %v446_v53, %v243_v45  ;;  %vm450_vm6 = vcmp.gt.f32.partialorder %v443_v49, 0.0 }
 0x21a   :  { %vm451_vm7 = vcmp.gt.f32.partialorder %v445_v52, 0.0  ;;  %v455_v56 = vmul.f32 0.01, %v445_v52  ;;  %v457_v58 = vsel %vm449_vm5, %v441_v47, %v453_v51 }
 0x21b   :  { %vm452_vm8 = vcmp.gt.f32.partialorder %v447_v55, 0.0  ;;  %v456_v57 = vmul.f32 0.01, %v447_v55  ;;  %v458_v61 = vsel %vm450_vm6, %v443_v49, %v454_v54 }
 0x21c   :  { %v459_v59 = vsel %vm451_vm7, %v445_v52, %v455_v56 }
 0x21d   :  { %v461_v60 = vpack.c.bf16 %v459_v59, %v457_v58  ;;  %v460_v62 = vsel %vm452_vm8, %v447_v55, %v456_v57 }
 0x21e   :  { %v462_v63 = vpack.c.bf16 %v460_v62, %v458_v61 }
 0x220   :  { %699 = vmatprep.mubr.bf16.mxu0 %v462_v63 }
 0x221   :  { %700 = vmatmul.mubr.bf16.vlgmr.msra.gmra.mrb[4].mxu0 %v461_v60 }
 0x2f4   :  { %v701_v11 = vpop.f32.mrb[4].mxu0 }
 0x2f5   :  { %v702_v12 = vadd.f32 %v701_v11, %v500_v9  ;;  %v703_v13 = vpop.f32.mrb[5].mxu0 }
 0x2f6   :  { %v704_v14 = vadd.f32 %v703_v13, %v504_v10  ;;  %v705_v15 = vpop.f32.mrb[6].mxu0 }
 0x2f7   :  { %v714_v16 = vmul.f32 0.01, %v702_v12  ;;  %v706_v17 = vadd.f32 %v705_v15, %v500_v9  ;;  %v707_v18 = vpop.f32.mrb[7].mxu0  ;;  %vm710_vm9 = vcmp.gt.f32.partialorder %v702_v12, 0.0 }
 0x2f8   :  { %v715_v19 = vmul.f32 0.01, %v704_v14  ;;  %v708_v20 = vadd.f32 %v707_v18, %v504_v10  ;;  %vm711_vm10 = vcmp.gt.f32.partialorder %v704_v14, 0.0 }
 0x2f9   :  { %vm712_vm11 = vcmp.gt.f32.partialorder %v706_v17, 0.0  ;;  %v716_v21 = vmul.f32 0.01, %v706_v17  ;;  %v718_v23 = vsel %vm710_vm9, %v702_v12, %v714_v16 }
 0x2fa   :  { %vm713_vm12 = vcmp.gt.f32.partialorder %v708_v20, 0.0  ;;  %v717_v22 = vmul.f32 0.01, %v708_v20  ;;  %v719_v6 = vsel %vm711_vm10, %v704_v14, %v715_v19 }
 0x2fb   :  { %v720_v4 = vsel %vm712_vm11, %v706_v17, %v716_v21 }
 0x2fc   :  { %v722_v24 = vpack.c.bf16 %v720_v4, %v718_v23  ;;  %v721_v25 = vsel %vm713_vm12, %v708_v20, %v717_v22 }
 0x2fd   :  { %v723_v26 = vpack.c.bf16 %v721_v25, %v719_v6 }
 0x2ff   :  { %891 = vmatprep.mubr.bf16.mxu1 %v723_v26 }
 0x300   :  { %892 = vmatmul.mubr.bf16.vlgmr.msra.gmra.mrb[4].mxu1 %v722_v24 }
 0x3d3   :  { %v1040_v27 = vpop.f32.mrb[4].mxu1 }
 0x3d4   :  { %v1041_v28 = vpop.f32.mrb[5].mxu1 }
 0x3d5   :  { %v1042_v29 = vadd.f32 %v1041_v28, %v1040_v27  ;;  %v1043_v30 = vpop.f32.mrb[6].mxu1 }
 0x3d6   :  { %v1044_v32 = vpop.f32.mrb[7].mxu1 }
 0x3d7   :  { %v1045_v33 = vadd.f32 %v1044_v32, %v1043_v30  ;;  %v894_v34 = vadd.f32 %v1042_v29, %v998_v31 }
 0x3d9   :  { %v897_v35 = vadd.f32 %v1045_v33, %v998_v31 }
 0x3db   :  { %v1022_v36 = vpack.c.bf16 %v897_v35, %v894_v34 }
 0x3dd   :  { %1023 = vst [vmem:[#allocation11] sm:$0xff] %v1022_v36  }
 0x3de   :  { %1296 = shalt.err (!%p1293_p2)
}
 0x3df   :  { %s1297_s8 = scalar_lea.hbm %s1511_s9, 128 }
 0x3e0   :  { %p1298_p3 = scmp.ne.s32.totalorder %s1511_s9, %s1297_s8  ;;  %p1301_p4 = scmp.lt.u32.totalorder %s1297_s8, %s1511_s9 }
 0x3e2   :  { %p1303_p5 = pnand %p1301_p4, %p1298_p3 }
 0x3e4   :  { %1306 = shalt.err (!%p1303_p5)
}
 0x3e5   :  { %921 = dma.vmem_to_hbm [thread:$0]  %s916_s13, 128, %s1511_s9, [#allocation4], %s1322_s3, %s1322_s3, %s1323_s21  }
 0x3e6   :  { %1313 = dma.done.wait [#allocation4], 128  }
 0x3e7   :  { %1314 = vsyncadd [#allocation4], 4294967168 }
 0x3e8   :  { %925 = vsyncpa [#allocation3], 1 }
 0x3e9   :  { %926 = vsyncpa [#allocation6], 1 }
 0x3ea   :  { %927 = vsyncpa [#allocation9], 1 }
 0x3eb   :  { %928 = vsyncpa [#allocation4], 1 }

</bundles_post_ra>
